<compile_context>
chip_gen: v6e
topology: v6e:2x2x1
jax: 0.10.0
libtpu: 0.0.40
codegen_flags: <defaults>
</compile_context>

<pallas_src>
import functools

import numpy as np
import jax
import jax.numpy as jnp
from jax import lax
from jax.experimental import pallas as pl
from jax.experimental.pallas import tpu as pltpu

FIELD_DIMS = (10, 12, 6, 4)          # per-field vocab sizes
NUM_FIELDS = len(FIELD_DIMS)
VOCAB = int(sum(FIELD_DIMS))         # total embedding rows (32)
EMBED_DIM = 32                       # F * D = 128 -> lane-dense output slab
BATCH = 16                           # 2 grid steps of tile_b=8 (v7x: one per TC)


def _features_embedding_kernel(x_ref, table_ref, out_ref, *, offsets):
    """One grid step = one batch tile.

    x_ref    : VMEM (tile_b, F)      int32  raw per-field indices
    table_ref: VMEM (V, D)           f32    full table, whole-array resident
    out_ref  : VMEM (tile_b, F * D)  f32    lane-dense output slab
    """
    tile_b, num_fields = x_ref.shape
    vocab, embed_dim = table_ref.shape

    x = x_ref[...]                                               # (tile_b, F) i32
    col = lax.broadcasted_iota(jnp.int32, (tile_b, vocab), 1)    # (tile_b, V)

    # offsets are compile-time Python ints, folded into the iota compare
    # (x[:, f] == col - offset_f): no offsets operand, no broadcast add.
    # F tiny compares concatenated along sublanes -> ONE field-major one-hot,
    # so the whole gather is a single MXU matmul below.
    one_hot = jnp.concatenate(
        [(x[:, f:f + 1] == (col - offsets[f])).astype(table_ref.dtype)
         for f in range(num_fields)],
        axis=0)                                                  # (F*tile_b, V)

    # Single MXU contraction. precision=HIGHEST so the one-hot gather returns
    # the stored f32 rows to ~1 ulp (default precision truncates the table to a
    # single bf16 pass — wrong for an embedding lookup).
    rows = jnp.dot(one_hot, table_ref[...],
                   precision=lax.Precision.HIGHEST,
                   preferred_element_type=jnp.float32)           # (F*tile_b, D)

    # Re-pack field-major rows into the lane-dense (tile_b, F*D) slab and emit
    # it with ONE unmasked full-width store (vs. four masked 32-lane stores).
    out_ref[...] = jnp.concatenate(
        [rows[f * tile_b:(f + 1) * tile_b, :] for f in range(num_fields)],
        axis=1).astype(out_ref.dtype)


def _pick_tile_b(batch):
    """Largest tile in {8..2048} that divides batch and leaves >= 2 grid steps
    (so the 'parallel' batch axis can span both v7x TensorCores); otherwise the
    whole batch in one step."""
    for cand in (2048, 1024, 512, 256, 128, 64, 32, 16, 8):
        if batch % cand == 0 and batch // cand >= 2:
            return cand
    return batch


def features_embedding(x, table, field_dims, *, tile_b=None):
    """x: (batch, num_fields) int32 raw per-field indices,
    table: (sum(field_dims), embed_dim) f32 -> (batch, num_fields, embed_dim)."""
    batch, num_fields = x.shape
    vocab, embed_dim = table.shape
    assert num_fields == len(field_dims)
    assert vocab == int(sum(field_dims))
    assert batch % 8 == 0, "pad batch to a multiple of 8 sublanes"

    # Same offsets as the PyTorch module: (0, *cumsum(field_dims)[:-1]).
    offsets = tuple(int(o) for o in (0, *np.cumsum(field_dims)[:-1]))

    if tile_b is None:
        tile_b = _pick_tile_b(batch)
    assert batch % tile_b == 0 and (tile_b % 8 == 0 or tile_b == batch)
    grid = (batch // tile_b,)

    out_lanes = num_fields * embed_dim
    itemsize = jnp.dtype(table.dtype).itemsize
    table_bytes = vocab * embed_dim * itemsize
    # single-buffered table + double-buffered x/out tiles + slack
    est_vmem = (table_bytes
                + 2 * tile_b * max(num_fields, 128) * 4
                + 2 * tile_b * out_lanes * itemsize
                + (1 << 20))
    # v6e: raise the 32 MiB scoped default so large tables stay VMEM-resident;
    # v7x (64 MiB physical): switch to the HBM + DMA-gather design instead once
    # the table passes roughly 25-30 MiB.
    vmem_limit = None if est_vmem <= (32 << 20) else min(int(est_vmem), 100 << 20)

    out2d = pl.pallas_call(
        functools.partial(_features_embedding_kernel, offsets=offsets),
        out_shape=jax.ShapeDtypeStruct((batch, out_lanes), table.dtype),
        grid=grid,
        in_specs=[
            # x: one (tile_b, F) int32 block per grid step.
            pl.BlockSpec((tile_b, num_fields), lambda i: (i, 0)),
            # table: whole array resident in VMEM once (no pipelining, no
            # double-buffering of a never-changing operand).
            pl.BlockSpec(memory_space=pltpu.MemorySpace.VMEM),
        ],
        out_specs=pl.BlockSpec((tile_b, out_lanes), lambda i: (i, 0)),
        compiler_params=pltpu.CompilerParams(
            dimension_semantics=("parallel",),      # batch axis -> v7x 2 TCs
            vmem_limit_bytes=vmem_limit,
        ),
        cost_estimate=pl.CostEstimate(
            flops=int(2 * batch * num_fields * vocab * embed_dim),
            transcendentals=0,
            bytes_accessed=int(x.size * x.dtype.itemsize
                               + table_bytes
                               + batch * out_lanes * itemsize),
        ),
    )(x, table)

    # Layout plumbing only: lane-dense (B, F*D) slab -> (B, F, D).
    return out2d.reshape(batch, num_fields, embed_dim)


if __name__ == "__main__":
    key = jax.random.PRNGKey(0)
    k_tab, k_x = jax.random.split(key)

    # Deterministic Xavier-uniform init, matching nn.init.xavier_uniform_ on a
    # (VOCAB, EMBED_DIM) weight.
    bound = float(np.sqrt(6.0 / (VOCAB + EMBED_DIM)))
    table = jax.random.uniform(
        k_tab, (VOCAB, EMBED_DIM), dtype=jnp.float32, minval=-bound, maxval=bound
    )

    # Raw per-field indices in [0, field_dims[f]).
    u = jax.random.uniform(k_x, (BATCH, NUM_FIELDS))
    x = jnp.floor(u * jnp.array(FIELD_DIMS, jnp.float32)[None, :]).astype(jnp.int32)

    out = jax.block_until_ready(features_embedding(x, table, FIELD_DIMS))

    # Pure-JAX reference: embedding(x + offsets). The HIGHEST-precision one-hot
    # matmul reproduces stored rows to ~1 ulp (tolerance 1e-6); a wrong gathered
    # row would differ by ~0.1+.
    offsets = jnp.array((0, *np.cumsum(FIELD_DIMS)[:-1]), dtype=jnp.int32)
    ref = table[x + offsets[None, :]]
    np.testing.assert_allclose(np.asarray(out), np.asarray(ref), rtol=0.0, atol=1e-6)
    assert out.shape == (BATCH, NUM_FIELDS, EMBED_DIM)
    assert out.dtype == jnp.float32

    print("KERNEL_OK")
</pallas_src>

<mosaic_0001>
module attributes {stable_mosaic.version = 11 : i64} {
  func.func @_features_embedding_kernel(%arg0: i32, %arg1: memref<8x4xi32, #tpu.memory_space<vmem>>, %arg2: memref<32x32xf32, #tpu.memory_space<vmem>>, %arg3: memref<8x128xf32, #tpu.memory_space<vmem>>) attributes {dimension_semantics = [#tpu.dimension_semantics<parallel>], iteration_bounds = array<i64: 2>, scalar_prefetch = 0 : i64, scratch_operands = 0 : i64, tpu.core_type = #tpu.core_type<tc>, window_params = [{transform_indices = @transform_0, window_bounds = array<i64: 8, 4>}, {pipeline_mode = #tpu.pipeline_mode<synchronous>, transform_indices = @transform_1, window_bounds = array<i64: 32, 32>}, {transform_indices = @transform_2, window_bounds = array<i64: 8, 128>}]} {
    %c0 = arith.constant 0 : index
    %c0_0 = arith.constant 0 : index
    %0 = vector.load %arg1[%c0, %c0_0] : memref<8x4xi32, #tpu.memory_space<vmem>>, vector<8x4xi32>
    %1 = tpu.iota {dimensions = array<i32: 1>} : vector<8x32xi32>
    %2 = vector.extract_strided_slice %0 {offsets = [0, 0], sizes = [8, 1], strides = [1, 1]} : vector<8x4xi32> to vector<8x1xi32>
    %c0_i32 = arith.constant 0 : i32
    %3 = vector.broadcast %c0_i32 : i32 to vector<8x32xi32>
    %4 = arith.subi %1, %3 : vector<8x32xi32>
    %5 = vector.broadcast %2 : vector<8x1xi32> to vector<8x32xi32>
    %6 = arith.cmpi eq, %5, %4 : vector<8x32xi32>
    %7 = arith.extui %6 : vector<8x32xi1> to vector<8x32xi32>
    %8 = arith.sitofp %7 : vector<8x32xi32> to vector<8x32xf32>
    %9 = vector.extract_strided_slice %0 {offsets = [0, 1], sizes = [8, 1], strides = [1, 1]} : vector<8x4xi32> to vector<8x1xi32>
    %c10_i32 = arith.constant 10 : i32
    %10 = vector.broadcast %c10_i32 : i32 to vector<8x32xi32>
    %11 = arith.subi %1, %10 : vector<8x32xi32>
    %12 = vector.broadcast %9 : vector<8x1xi32> to vector<8x32xi32>
    %13 = arith.cmpi eq, %12, %11 : vector<8x32xi32>
    %14 = arith.extui %13 : vector<8x32xi1> to vector<8x32xi32>
    %15 = arith.sitofp %14 : vector<8x32xi32> to vector<8x32xf32>
    %16 = vector.extract_strided_slice %0 {offsets = [0, 2], sizes = [8, 1], strides = [1, 1]} : vector<8x4xi32> to vector<8x1xi32>
    %c22_i32 = arith.constant 22 : i32
    %17 = vector.broadcast %c22_i32 : i32 to vector<8x32xi32>
    %18 = arith.subi %1, %17 : vector<8x32xi32>
    %19 = vector.broadcast %16 : vector<8x1xi32> to vector<8x32xi32>
    %20 = arith.cmpi eq, %19, %18 : vector<8x32xi32>
    %21 = arith.extui %20 : vector<8x32xi1> to vector<8x32xi32>
    %22 = arith.sitofp %21 : vector<8x32xi32> to vector<8x32xf32>
    %23 = vector.extract_strided_slice %0 {offsets = [0, 3], sizes = [8, 1], strides = [1, 1]} : vector<8x4xi32> to vector<8x1xi32>
    %c28_i32 = arith.constant 28 : i32
    %24 = vector.broadcast %c28_i32 : i32 to vector<8x32xi32>
    %25 = arith.subi %1, %24 : vector<8x32xi32>
    %26 = vector.broadcast %23 : vector<8x1xi32> to vector<8x32xi32>
    %27 = arith.cmpi eq, %26, %25 : vector<8x32xi32>
    %28 = arith.extui %27 : vector<8x32xi1> to vector<8x32xi32>
    %29 = arith.sitofp %28 : vector<8x32xi32> to vector<8x32xf32>
    %30 = tpu.concatenate %8, %15, %22, %29 in 0 : vector<8x32xf32>, vector<8x32xf32>, vector<8x32xf32>, vector<8x32xf32> -> vector<32x32xf32>
    %c0_1 = arith.constant 0 : index
    %c0_2 = arith.constant 0 : index
    %31 = vector.load %arg2[%c0_1, %c0_2] : memref<32x32xf32, #tpu.memory_space<vmem>>, vector<32x32xf32>
    %cst = arith.constant dense<0.000000e+00> : vector<32x32xf32>
    %32 = tpu.matmul %30, %31, %cst {dimension_numbers = #tpu.dot_dimension_numbers<[1], [0], [0], [1], [0, 0, 1, 1], [], []>, precision = #tpu.contract_precision<fp32>} : vector<32x32xf32>, vector<32x32xf32>, vector<32x32xf32> -> vector<32x32xf32>
    %33 = vector.extract_strided_slice %32 {offsets = [0, 0], sizes = [8, 32], strides = [1, 1]} : vector<32x32xf32> to vector<8x32xf32>
    %34 = vector.extract_strided_slice %32 {offsets = [8, 0], sizes = [8, 32], strides = [1, 1]} : vector<32x32xf32> to vector<8x32xf32>
    %35 = vector.extract_strided_slice %32 {offsets = [16, 0], sizes = [8, 32], strides = [1, 1]} : vector<32x32xf32> to vector<8x32xf32>
    %36 = vector.extract_strided_slice %32 {offsets = [24, 0], sizes = [8, 32], strides = [1, 1]} : vector<32x32xf32> to vector<8x32xf32>
    %37 = tpu.concatenate %33, %34, %35, %36 in 1 : vector<8x32xf32>, vector<8x32xf32>, vector<8x32xf32>, vector<8x32xf32> -> vector<8x128xf32>
    %c0_3 = arith.constant 0 : index
    %c0_4 = arith.constant 0 : index
    %38 = vector.load %arg3[%c0_3, %c0_4] : memref<8x128xf32, #tpu.memory_space<vmem>>, vector<8x128xf32>
    tpu.vector_store %arg3[%c0_3, %c0_4], %37 {strides = array<i32>} : memref<8x128xf32, #tpu.memory_space<vmem>>, vector<8x128xf32>,
    return
  }
  func.func @transform_0(%arg0: i32) -> (i32, i32) {
    %c0_i32 = arith.constant 0 : i32
    %c0_i32_0 = arith.constant 0 : i32
    return %arg0, %c0_i32 : i32, i32
  }
  func.func @transform_1(%arg0: i32) -> (i32, i32) {
    %c0_i32 = arith.constant 0 : i32
    %c0_i32_0 = arith.constant 0 : i32
    %c0_i32_1 = arith.constant 0 : i32
    return %c0_i32, %c0_i32_0 : i32, i32
  }
  func.func @transform_2(%arg0: i32) -> (i32, i32) {
    %c0_i32 = arith.constant 0 : i32
    %c0_i32_0 = arith.constant 0 : i32
    return %arg0, %c0_i32 : i32, i32
  }
}

</mosaic_0001>

<bundles_post_ra>
// kernel: tpu_custom_call.1
= control target key start
LH: loop header
LB: loop body
LE: loop exit
PB: predicated region body
PF: predicated region fallthrough
CT: control target
= control target key end

     0   :  { %7 = vsyncpa [#allocation3], 0  ;;  %s1497_s0 = inlined_call_operand.vmem [shape: s32[16,4], index: 0, kind: input, shape index: {}]   ;;  %s1498_s1 = inlined_call_operand.hbm [shape: f32[32,32], index: 1, kind: input, shape index: {}]   ;;  %s1499_s2 = inlined_call_operand.hbm [shape: f32[16,128], index: 2, kind: output, shape index: {}]  }
   0x1   :  { %8 = vsyncpa [#allocation4], 0 }
   0x2   :  { %10 = vsyncpa [#allocation4 + $0x1], 0  ;;  %s1265_s9 = smov 0   ;;  %s1267_s10 = smov 0  }
   0x3   :  { %s1269_s11 = smov 0   ;;  %s1271_s12 = smov 0  }
   0x4 LB: > { %s1286_s13 = sadd.s32 4294967295, %s1236_s12   ;;  %s918_s14 = sadd.s32 4294967294, %s1236_s12   ;;  %s1236_s12 = sphi %s1271_s12, %s1507_s12   ;;  %s1232_s11 = sphi %s1269_s11, %s1506_s11   ;;  %s1228_s10 = sphi %s1267_s10, %s1505_s10   ;;  %s1224_s9 = sphi %s1265_s9, %s1504_s9  }
   0x5   : > { %s1290_s15 = sadd.s32 1, %s1236_s12   ;;  %s70_s16 = sadd.s32 1, %s1232_s11 }
   0x6   : > { %s67_s17 = ssub.s32 %s1236_s12, %s1290_s15  ;;  %p80_p0 = scmp.ne.s32.totalorder %s1232_s11, %s1228_s10 }
   0x7   : > { %p68_p1 = scmp.eq.s32.totalorder %s67_s17, 0  ;;  %p81_p2 = scmp.eq.s32.totalorder %s1286_s13, 1 }
   0x8   : > { %p86_p3 = scmp.ne.s32.totalorder %s1228_s10, %s1224_s9  ;;  %p87_p4 = scmp.eq.s32.totalorder %s918_s14, 1 }
   0x9   : > { %s1301_s18 = scalar_select %p68_p1, %s1232_s11, %s70_s16  }
   0xa   : > { %p1303_p5 = por %p81_p2, %p80_p0  ;;  %p1307_p6 = por %p87_p4, %p86_p3 }
   0xb   : > { %p919_p7 = scmp.ge.s32.totalorder %s1236_s12, 1  ;;  %p94_p8 = scmp.lt.s32.totalorder %s1236_s12, 3 }
   0xc   : > { %s1501_s20 = scalar_select %p1307_p6, 1, 0 }
   0xd   : > { %p1095_p9 = scmp.eq.s32.totalorder %s1286_s13, 0  ;;  %p1314_p10 = pnand %p919_p7, %p94_p8 }
   0xe   : > { %s1238_s22 = smov [#allocation2]  }
   0xf   : > { %s106_s23 = sshll.u32 %s1238_s22, 4  ;;  %p1087_p11 = pneg %p1314_p10  ;;  %s107_s23 = int_to_ptr.vmem [resolvable:$true] %s106_s23 }
  0x10   : > { %s1157_s24 = scalar_lea.vmem %s107_s23, 512  ;;  %p1165_p3 = scmp.lt.s32.totalorder %s107_s23, %s107_s23 }
  0x11   : > { %p1088_p12 = pnand %p1095_p9, %p1087_p11  ;;  %p1158_p0 = scmp.ne.s32.totalorder %s107_s23, %s1157_s24 }
  0x12   : > { %p1166_p4 = scmp.lt.s32.totalorder %s1157_s24, %s1157_s24 }
  0x13   : > { %p1148_p13 = pneg %p1088_p12 }
  0x14   : > { %p1167_p6 = por %p1166_p4, %p1165_p3 }
  0x15   : > { %p1160_p1 = pnand %p1158_p0, %p1148_p13 }
  0x17   : > { %p1161_p2 = pneg %p1160_p1 }
  0x19   : > { %p1168_p7 = pnand %p1167_p6, %p1161_p2 }
  0x1b   : > { %1171 = shalt.err (!%p1168_p7)
}
  0x1c   : > { %s1239_s25 = smov 128   ;;  %s1240_s26 = smov 8  }
  0x1d   : > { %1090 = dma.hbm_to_vmem [thread:$0]  (!%p1088_p12), %s1498_s1, 512, %s107_s23, [#allocation3], %s1239_s25, %s1239_s25, %s1240_s26  }
  0x1e   : > { %129 = sbr.rel (%p1314_p10) target bundleno = 537 (0x219), region = 28 }
  0x23   : > { %1215 = dma.done.wait (%p1095_p9), [#allocation3], 512  }
  0x24   : > { %1217 = vsyncadd (%p1095_p9), [#allocation3], 4294966784  ;;  %p150_p8 = scmp.lt.s32.totalorder %s1286_s13, 1  ;;  %v1241_v0 = vmov 0   ;;  %v1242_v1 = vmov 2   ;;  %v187_v3 = vld [vmem:[#allocation2 + $0x18] sm:$0xff]  ;;  %v155_v29 = vlaneseq }
  0x25   : > { %1141 = vset.pattern.permute.xlu0 %v1241_v0  ;;  %1143 = vset.pattern.permute.xlu1 %v1242_v1  ;;  %v186_v4 = vld [vmem:[#allocation2 + $0x10] sm:$0xff]  ;;  %v1336_v5 = vand.u32 4294901760, %v187_v3  ;;  %v185_v7 = vld [vmem:[#allocation2 + $0x8] sm:$0xff]  ;;  %v184_v8 = vld [vmem:[#allocation2] sm:$0xff]  ;;  %v1243_v15 = vmov 1   ;;  %v1244_v16 = vmov 3  }
  0x26   : > { %s151_s29 = scalar_select %p150_p8, %s1286_s13, 1  ;;  %v1338_v6 = vand.u32 4294901760, %v186_v4  ;;  %v1340_v9 = vand.u32 4294901760, %v185_v7  ;;  %v1342_v10 = vand.u32 4294901760, %v184_v8  ;;  %v156_v30 = vand.u32 127, %v155_v29 }
  0x27   : > { %v1345_v11 = vsub.f32 %v187_v3, %v1336_v5  ;;  %997 = vmatprep.subr.mxu0 %v1336_v5  ;;  %vm188_vm0 = vcmask 261120   ;;  %v1245_v34 = vmov 0.0   ;;  %s1246_s6 = smov 32   ;;  %s1247_s7 = smov 96   ;;  %vm828_vm5 = vcmask 523264  }
  0x28   : > { %s925_s30 = sshll.u32 %s151_s29, 3  ;;  %v1348_v12 = vsub.f32 %v186_v4, %v1338_v6  ;;  %v1352_v13 = vsub.f32 %v185_v7, %v1340_v9  ;;  %v1355_v14 = vsub.f32 %v184_v8, %v1342_v10  ;;  %998 = vmatpush3.msra.mxu0 %v1336_v5  ;;  %v929_v31 = vadd.s32 4294967274, %v156_v30  ;;  %s1248_s8 = smov 64  }
  0x29   : > { %s153_s5 = scalar_lea.vmem %s1497_s0, %s925_s30  ;;  %v1359_v17 = vand.u32 4294901760, %v1345_v11  ;;  %999 = vmatprep.subr.mxu0 %v1338_v6  ;;  %v927_v37 = vadd.s32 4294967286, %v156_v30  ;;  %v931_v38 = vadd.s32 4294967268, %v156_v30  ;;  %s147_s14 = sand.u32 1, %s1228_s10   ;;  %vm830_vm6 = vcmask 785408  }
  0x2a   : > { %v154_v2 = vld [vmem:[%s153_s5] sm:$0xff]  ;;  %v1362_v18 = vand.u32 4294901760, %v1348_v12  ;;  %v1365_v19 = vand.u32 4294901760, %v1352_v13  ;;  %v1368_v20 = vand.u32 4294901760, %v1355_v14  ;;  %1000 = vmatpush3.msra.mxu0 %v1338_v6  ;;  %s924_s16 = sshll.u32 %s147_s14, 3  ;;  %s946_s17 = sshll.u32 %s1286_s13, 7 }
  0x2b   : > { %158 = vperm.xlu0 %1141, %v154_v2   ;;  %172 = vperm.xlu1 %1143, %v154_v2   ;;  %v338_v21 = vsub.f32 %v1345_v11, %v1359_v17  ;;  %s149_s21 = scalar_lea.vmem [#allocation5], %s924_s16  ;;  %s1462_s25 = scalar_lea.hbm %s1499_s2, %s946_s17 }
  0x2c   : > { %v345_v22 = vsub.f32 %v1348_v12, %v1362_v18  ;;  %v352_v23 = vsub.f32 %v1352_v13, %v1365_v19  ;;  %v359_v26 = vsub.f32 %v1355_v14, %v1368_v20  ;;  %1001 = vmatprep.subr.mxu0 %v1340_v9  ;;  %s847_s22 = sshll.u32 %s149_s21, 4  ;;  %s834_s26 = scalar_lea.sflag [#allocation4], %s147_s14  ;;  %s848_s22 = int_to_ptr.vmem [resolvable:$true] %s847_s22 }
  0x2d   : > { %v339_v24 = vand.u32 4294901760, %v338_v21  ;;  %1002 = vmatpush3.msra.mxu0 %v1340_v9  ;;  %s1172_s27 = scalar_lea.vmem %s848_s22, 128  ;;  %s1249_s13 = smov [#allocation5]  }
  0x2e   : > { %v346_v25 = vand.u32 4294901760, %v345_v22  ;;  %v353_v27 = vand.u32 4294901760, %v352_v23  ;;  %1003 = vmatprep.subr.mxu0 %v1342_v10  ;;  %v360_v28 = vand.u32 4294901760, %v359_v26  ;;  %p1173_p6 = scmp.ne.s32.totalorder %s848_s22, %s1172_s27  ;;  %s1176_s28 = sshll.u32 %s1249_s13, 4  ;;  %s1177_s28 = int_to_ptr.vmem [resolvable:$false] %s1176_s28 }
  0x2f   : > { %1142 = vset.pattern.permute.xlu0 %v1243_v15  ;;  %1144 = vset.pattern.permute.xlu1 %v1244_v16  ;;  %s1178_s29 = scalar_lea.vmem %s1177_s28, 256  ;;  %p1179_p11 = scmp.lt.s32.totalorder %s848_s22, %s1177_s28 }
  0x30   : > { %165 = vperm.xlu0 %1142, %v154_v2   ;;  %179 = vperm.xlu1 %1144, %v154_v2   ;;  %p1174_p9 = pnand %p1173_p6, %p1303_p5  ;;  %p1180_p12 = scmp.lt.s32.totalorder %s1178_s29, %s1172_s27 }
  0x31   : > { %1011 = vmatprep.subr.mxu1 %v339_v24  ;;  %1004 = vmatpush3.msra.mxu0 %v1342_v10 }
  0x32   : > { %1012 = vmatpush3.msra.mxu1 %v339_v24  ;;  %1025 = vmatprep.subr.mxu0 %v1345_v11  ;;  %p1175_p10 = pneg %p1174_p9  ;;  %p1181_p13 = por %p1180_p12, %p1179_p11 }
  0x33   : > { %1013 = vmatprep.subr.mxu1 %v346_v25 }
  0x34   : > { %1145 = vset.pattern.permute.xlu0 %v1244_v16  ;;  %1014 = vmatpush3.msra.mxu1 %v346_v25  ;;  %p1182_p0 = pnand %p1181_p13, %p1175_p10 }
  0x35   : > { %1015 = vmatprep.subr.mxu1 %v353_v27 }
  0x36   : > { %1016 = vmatpush3.msra.mxu1 %v353_v27 }
  0x37   : > { %1017 = vmatprep.subr.mxu1 %v360_v28 }
  0x38   : > { %1018 = vmatpush3.msra.mxu1 %v360_v28 }
  0x39   : > { %1039 = vmatprep.subr.mxu1 %v1336_v5 }
  0xa6   : > { %v159_v32 = vpop.permute.xlu0 %158  ;;  %v173_v33 = vpop.permute.xlu1 %172 }
  0xa7   : > { %vm160_vm1 = vcmp.eq.s32.totalorder %v159_v32, %v156_v30  ;;  %vm174_vm2 = vcmp.eq.s32.totalorder %v173_v33, %v929_v31 }
  0xa8   : > { %v1386_v35 = vsel %vm160_vm1, 1.0, %v1245_v34  ;;  %v1388_v36 = vsel %vm174_vm2, 1.0, %v1245_v34 }
  0xa9   : > { %v196_v39 = vsel %vm188_vm0, %v1388_v36, 0  ;;  %1019 = vmatprep.mubr.msk.f32.mxu1 %vm188_vm0, %v1386_v35  ;;  %v190_v40 = vsel %vm188_vm0, %v1386_v35, 0 }
  0xaa   : > { %v271_v41 = vsub.f32 %v190_v40, %v190_v40  ;;  %v291_v44 = vsub.f32 %v196_v39, %v196_v39 }
  0xab   : > { %v166_v42 = vpop.permute.xlu0 %165  ;;  %v180_v43 = vpop.permute.xlu1 %179 }
  0xac   : > { %vm167_vm3 = vcmp.eq.s32.totalorder %v166_v42, %v927_v37  ;;  %vm181_vm4 = vcmp.eq.s32.totalorder %v180_v43, %v931_v38  ;;  %v272_v45 = vand.u32 4294901760, %v271_v41  ;;  %v292_v54 = vand.u32 4294901760, %v291_v44 }
  0xad   : > { %v1396_v46 = vsel %vm167_vm3, 1.0, %v1245_v34  ;;  %v1398_v47 = vsel %vm181_vm4, 1.0, %v1245_v34 }
  0xae   : > { %v193_v48 = vsel %vm188_vm0, %v1396_v46, 0  ;;  %v199_v49 = vsel %vm188_vm0, %v1398_v47, 0  ;;  %1020 = vmatmul.mubr.msk.f32.vlgmr.msra.gmra.mxu1 %vm188_vm0, %v1396_v46  ;;  %v273_v50 = vsub.f32 %v271_v41, %v272_v45  ;;  %v293_v57 = vsub.f32 %v291_v44, %v292_v54 }
  0xaf   : > { %v281_v51 = vsub.f32 %v193_v48, %v193_v48  ;;  %1022 = vmatprep.mubr.msk.f32.mxu1 %vm188_vm0, %v1388_v36  ;;  %1040 = vmatpush3.msra.mxu1 %v1336_v5  ;;  %v301_v52 = vsub.f32 %v199_v49, %v199_v49 }
  0xb0   : > { %1041 = vmatprep.subr.mxu1 %v1338_v6  ;;  %v274_v53 = vand.u32 4294901760, %v273_v50  ;;  %v294_v60 = vand.u32 4294901760, %v293_v57 }
  0xb1   : > { %v282_v55 = vand.u32 4294901760, %v281_v51  ;;  %1042 = vmatpush3.msra.mxu1 %v1338_v6  ;;  %v302_v58 = vand.u32 4294901760, %v301_v52 }
  0xb2   : > { %1005 = vmatprep.mubr.f32.mxu0 %v274_v53  ;;  %1023 = vmatmul.mubr.msk.f32.gmra.mxu1 %vm188_vm0, %v1398_v47 }
  0xb3   : > { %1043 = vmatprep.subr.mxu1 %v1340_v9  ;;  %1047 = vmatprep.mubr.f32.mxu1 %v272_v45  ;;  %v283_v56 = vsub.f32 %v281_v51, %v282_v55  ;;  %v303_v61 = vsub.f32 %v301_v52, %v302_v58 }
  0xb4   : > { %1044 = vmatpush3.msra.mxu1 %v1340_v9 }
  0xb5   : > { %1045 = vmatprep.subr.mxu1 %v1342_v10  ;;  %v284_v59 = vand.u32 4294901760, %v283_v56  ;;  %v304_v62 = vand.u32 4294901760, %v303_v61 }
  0xb6   : > { %1046 = vmatpush3.msra.mxu1 %v1342_v10 }
  0xb7   : > { %1048 = vmatmul.mubr.f32.vlgmr.msra.gmra.mxu1 %v282_v55  ;;  %1067 = vmatprep.subr.mxu1 %v1336_v5 }
  0xb8   : > { %1006 = vmatmul.mubr.f32.vlgmr.msra.gmra.mxu0 %v284_v59  ;;  %1050 = vmatprep.mubr.f32.mxu1 %v292_v54 }
  0xb9   : > { %1026 = vmatpush3.msra.mxu0 %v1345_v11  ;;  %1068 = vmatpush3.msra.mxu1 %v1336_v5 }
  0xba   : > { %1008 = vmatprep.mubr.f32.mxu0 %v294_v60  ;;  %1027 = vmatprep.subr.mxu0 %v1348_v12 }
  0xbb   : > { %1069 = vmatprep.subr.mxu1 %v1338_v6  ;;  %1028 = vmatpush3.msra.mxu0 %v1348_v12 }
  0xbc   : > { %1070 = vmatpush3.msra.mxu1 %v1338_v6  ;;  %1029 = vmatprep.subr.mxu0 %v1352_v13 }
  0xbd   : > { %1051 = vmatmul.mubr.f32.gmra.mxu1 %v302_v58  ;;  %1071 = vmatprep.subr.mxu1 %v1340_v9 }
  0xbe   : > { %1009 = vmatmul.mubr.f32.gmra.mxu0 %v304_v62  ;;  %1072 = vmatpush3.msra.mxu1 %v1340_v9 }
  0xbf   : > { %1030 = vmatpush3.msra.mxu0 %v1352_v13  ;;  %1075 = vmatprep.mubr.msk.f32.mxu1 %vm188_vm0, %v1386_v35 }
  0xc0   : > { %1031 = vmatprep.subr.mxu0 %v1355_v14  ;;  %1033 = vmatprep.mubr.f32.mxu0 %v271_v41 }
  0xc1   : > { %1073 = vmatprep.subr.mxu1 %v1342_v10  ;;  %1032 = vmatpush3.msra.mxu0 %v1355_v14 }
  0xc2   : > { %1074 = vmatpush3.msra.mxu1 %v1342_v10  ;;  %1053 = vmatprep.subr.mxu0 %v1359_v17 }
  0xc3   : > { %1076 = vmatmul.mubr.msk.f32.vlgmr.msra.gmra.mxu1 %vm188_vm0, %v1396_v46  ;;  %1034 = vmatmul.mubr.f32.vlgmr.msra.gmra.mxu0 %v281_v51 }
  0xc4   : > { %1054 = vmatpush3.msra.mxu0 %v1359_v17  ;;  %1078 = vmatprep.mubr.msk.f32.mxu1 %vm188_vm0, %v1388_v36 }
  0xc5   : > { %1036 = vmatprep.mubr.f32.mxu0 %v291_v44  ;;  %1055 = vmatprep.subr.mxu0 %v1362_v18 }
  0xc6   : > { %1056 = vmatpush3.msra.mxu0 %v1362_v18 }
  0xc7   : > { %1057 = vmatprep.subr.mxu0 %v1365_v19  ;;  %1079 = vmatmul.mubr.msk.f32.gmra.mxu1 %vm188_vm0, %v1398_v47 }
  0xc8   : > { %1037 = vmatmul.mubr.f32.gmra.mxu0 %v301_v52 }
  0xc9   : > { %1058 = vmatpush3.msra.mxu0 %v1365_v19  ;;  %1061 = vmatprep.mubr.msk.f32.mxu0 %vm188_vm0, %v1386_v35 }
  0xca   : > { %1059 = vmatprep.subr.mxu0 %v1368_v20 }
  0xcb   : > { %1060 = vmatpush3.msra.mxu0 %v1368_v20 }
  0xcc   : > { %1062 = vmatmul.mubr.msk.f32.vlgmr.msra.gmra.mxu0 %vm188_vm0, %v1396_v46 }
  0xcd   : > { %1064 = vmatprep.mubr.msk.f32.mxu0 %vm188_vm0, %v1388_v36 }
  0xd0   : > { %1065 = vmatmul.mubr.msk.f32.gmra.mxu0 %vm188_vm0, %v1398_v47 }
 0x16e   : > { %v1021_v63 = vpop.f32.mrf.mxu1 }
 0x170   : > { %v397_v0 = vpop.f32.mrf.mxu1 }
 0x172   : > { %v1024_v1 = vpop.f32.mrf.mxu1 }
 0x174   : > { %v409_v2 = vpop.f32.mrf.mxu1 }
 0x177   : > { %v1049_v3 = vpop.f32.mrf.mxu1 }
 0x178   : > { %v1007_v4 = vpop.f32.mrf.mxu0 }
 0x179   : > { %v593_v7 = vpop.f32.mrf.mxu1  ;;  %v404_v13 = vadd.f32 %v1021_v63, %v1007_v4 }
 0x17a   : > { %v276_v5 = vpop.f32.mrf.mxu0 }
 0x17b   : > { %v398_v6 = vadd.f32 %v397_v0, %v276_v5 }
 0x17d   : > { %v1052_v9 = vpop.f32.mrf.mxu1 }
 0x17e   : > { %v1010_v8 = vpop.f32.mrf.mxu0 }
 0x17f   : > { %v609_v12 = vpop.f32.mrf.mxu1  ;;  %v416_v20 = vadd.f32 %v1024_v1, %v1010_v8 }
 0x180   : > { %v296_v10 = vpop.f32.mrf.mxu0 }
 0x181   : > { %v410_v22 = vadd.f32 %v409_v2, %v296_v10 }
 0x183   : > { %v1035_v11 = vpop.f32.mrf.mxu0  ;;  %v1077_v17 = vpop.f32.mrf.mxu1 }
 0x184   : > { %v503_v16 = vadd.f32 %v1035_v11, %v404_v13 }
 0x185   : > { %v495_v14 = vpop.f32.mrf.mxu0  ;;  %v793_v25 = vpop.f32.mrf.mxu1 }
 0x186   : > { %v496_v15 = vadd.f32 %v495_v14, %v398_v6  ;;  %v602_v24 = vadd.f32 %v1049_v3, %v503_v16 }
 0x187   : > { %v1080_v33 = vpop.f32.mrf.mxu1 }
 0x188   : > { %v1038_v18 = vpop.f32.mrf.mxu0  ;;  %v594_v19 = vadd.f32 %v593_v7, %v496_v15 }
 0x189   : > { %v517_v23 = vadd.f32 %v1038_v18, %v416_v20  ;;  %v805_v41 = vpop.f32.mrf.mxu1 }
 0x18a   : > { %v509_v21 = vpop.f32.mrf.mxu0 }
 0x18b   : > { %v510_v27 = vadd.f32 %v509_v21, %v410_v22  ;;  %v618_v32 = vadd.f32 %v1052_v9, %v517_v23 }
 0x18c   : > { %v1063_v26 = vpop.f32.mrf.mxu0 }
 0x18d   : > { %v707_v28 = vadd.f32 %v1063_v26, %v602_v24  ;;  %v610_v37 = vadd.f32 %v609_v12, %v510_v27 }
 0x18e   : > { %v700_v29 = vpop.f32.mrf.mxu0 }
 0x18f   : > { %v800_v30 = vadd.f32 %v1077_v17, %v707_v28  ;;  %v701_v31 = vadd.f32 %v700_v29, %v594_v19 }
 0x190   : > { %v1066_v34 = vpop.f32.mrf.mxu0 }
 0x191   : > { %v794_v35 = vadd.f32 %v793_v25, %v701_v31  ;;  %v719_v36 = vadd.f32 %v1066_v34, %v618_v32  ;;  %816 = vrot.lane.b32.xlu1 %v800_v30, %s1246_s6 }
 0x192   : > { %v712_v38 = vpop.f32.mrf.mxu0 }
 0x193   : > { %v812_v39 = vadd.f32 %v1080_v33, %v719_v36  ;;  %v713_v40 = vadd.f32 %v712_v38, %v610_v37 }
 0x195   : > { %v806_v42 = vadd.f32 %v805_v41, %v713_v40  ;;  %824 = vrot.lane.b32.xlu1 %v812_v39, %s1247_s7 }
 0x197   : > { %820 = vrot.lane.b32.xlu0 %v806_v42, %s1248_s8 }
 0x203   : > { %v817_v43 = vpop.permute.xlu1 %816 }
 0x204   : > { %v827_v44 = vsel %vm188_vm0, %v794_v35, %v817_v43 }
 0x207   : > { %v825_v46 = vpop.permute.xlu1 %824 }
 0x209   : > { %v821_v45 = vpop.permute.xlu0 %820 }
 0x20a   : > { %v829_v47 = vsel %vm828_vm5, %v827_v44, %v821_v45 }
 0x20b   : > { %v831_v48 = vsel %vm830_vm6, %v829_v47, %v825_v46 }
 0x20c   : > { %832 = vst [vmem:[%s149_s21] sm:$0xff] %v831_v48 }
 0x20d   : > { %1185 = shalt.err (!%p1182_p0)
}
 0x20e   : > { %s1186_s30 = scalar_lea.hbm %s1462_s25, 128  ;;  %s1190_s5 = scalar_lea.hbm %s1499_s2, 256 }
 0x20f   : > { %p1187_p1 = scmp.ne.s32.totalorder %s1462_s25, %s1186_s30  ;;  %p1191_p4 = scmp.lt.s32.totalorder %s1462_s25, %s1499_s2 }
 0x210   : > { %p1192_p7 = scmp.lt.s32.totalorder %s1190_s5, %s1186_s30 }
 0x211   : > { %p1188_p2 = pnand %p1187_p1, %p1303_p5 }
 0x212   : > { %p1193_p8 = por %p1192_p7, %p1191_p4 }
 0x213   : > { %p1189_p3 = pneg %p1188_p2 }
 0x215   : > { %p1194_p6 = pnand %p1193_p8, %p1189_p3 }
 0x217   : > { %1197 = shalt.err (!%p1194_p6)
}
 0x218   : > { %1085 = dma.vmem_to_hbm [thread:$0]  (%p1303_p5), %s848_s22, 128, %s1462_s25, %s834_s26  }
 0x219 PF: > { %p1097_p9 = scmp.ge.s32.totalorder %s1236_s12, 2  ;;  %s859_s8 = sand.u32 1, %s1224_s9  }
 0x21a   : > { %p1503_p10 = scmp.ne.s32.totalorder %s1501_s20, 0  ;;  %s860_s14 = scalar_lea.sflag [#allocation4], %s859_s8 }
 0x21c   : > { %p1092_p11 = pnand %p1097_p9, %p1503_p10 }
 0x21e   : > { %p1093_p12 = pneg %p1092_p11 }
 0x220   : > { %1219 = dma.done.wait (%p1093_p12), %s860_s14, 128  }
 0x221   : > { %1221 = vsyncadd (%p1093_p12), %s860_s14, 4294967168  ;;  %p13_p13 = scmp.ge.s32.totalorder %s1290_s15, 4   ;;  %s1504_s9 = smov %s1228_s10 }
 0x222   : > { %s1505_s10 = smov %s1232_s11  ;;  %s1506_s11 = smov %s1301_s18 }
 0x223   : > { %s1507_s12 = smov %s1290_s15  ;;  %15 = sbr.rel (!%p13_p13) target bundleno = 4 (0x4), region = 68 }
 0x228   :  { %865 = vsyncpa [#allocation3], 1 }
 0x229   :  { %867 = vsyncpa [#allocation3 + $0x1], 1 }
 0x22a   :  { %868 = vsyncpa [#allocation4], 1 }
 0x22b   :  { %870 = vsyncpa [#allocation4 + $0x1], 1 }

</bundles_post_ra>
